<compile_context>
chip_gen: v6e
topology: v6e:2x2x1
jax: 0.10.0
libtpu: 0.0.40
codegen_flags: <defaults>
</compile_context>

<pallas_src>
import functools

import jax
import jax.numpy as jnp
from jax import lax
from jax.experimental import pallas as pl
from jax.experimental.pallas import tpu as pltpu

ACT_SCALE = 0.05  # deterministic synthetic activation-quant scale


# ---------------- fused Pallas kernel ----------------

def _fused_forward_kernel(at_ref, wc_ref, bc_ref, wfc_ref, bfc_ref, o_ref):
    # at_ref : (K=KH*KW*Cin, N*H*W)   im2col^T of the zero-padded input (f32)
    # wc_ref : (Cout, K)              conv weight * ACT_SCALE (scale folded at init)
    # bc_ref : (Cout, 1)              conv bias
    # wfc_ref: (Cout, H*W, Dp)        FC weight permuted to (c, p, d), d zero-padded to 128
    # bfc_ref: (1, Dp)                FC bias (zero-padded)
    # o_ref  : (N, Dp)                lane-dense output; sliced back to Dout outside
    Cout = wc_ref.shape[0]
    N = o_ref.shape[0]
    HW = wfc_ref.shape[1]

    # features[0]: QuantIdentity — symmetric int8 codes.  Same `x / ACT_SCALE` expression
    # as the reference; the de-quant multiply is folded into wc_ref.  Padded zeros stay 0.
    codes = jnp.clip(jnp.round(at_ref[...] / ACT_SCALE), -128.0, 127.0)

    # features[1] + features[2]: QuantConv2d(3x3, pad=1) + bias + QuantReLU as ONE im2col
    # matmul, accumulated lane-dense as (Cout, N*H*W).
    conv = jnp.dot(wc_ref[...], codes, preferred_element_type=jnp.float32)
    conv = jnp.maximum(conv + bc_ref[...], 0.0)

    # features[3] + features[4]: Flatten (NCHW order, absorbed into wfc at init) + QuantLinear.
    #   out[n, d] = sum_{c,p} conv[c, n*HW + p] * wfc[c, p, d]
    # (Cout, N*HW) -> (Cout, N, HW) is a free 128-aligned lane split; one batched MXU
    # contraction over p with c as the batch dim, then a reduce over c.  No sublane
    # slices / concatenates.
    conv3 = conv.reshape(Cout, N, HW)
    prod = jnp.einsum('cnp,cpd->cnd', conv3, wfc_ref[...],
                      preferred_element_type=jnp.float32)          # (Cout, N, Dp)
    o_ref[...] = (prod.sum(axis=0) + bfc_ref[...]).astype(o_ref.dtype)


# ---------------- wrapper (jitted together with the kernel) ----------------

def _generic_quant_forward(x_nchw, wc_s, b_conv, wfc3p, b_fc_p, *, dout):
    N, Cin, H, W = x_nchw.shape
    Cout, K = wc_s.shape
    HW = H * W
    Dp = wfc3p.shape[2]

    # Minimal layout glue (fuses into one tiny copy):
    #   NCHW -> (Cin, N, H, W), zero-pad spatial, 9 static tap slices stacked tap-major,
    #   reshape -> (K, N*H*W).  Row order k = (kh*3+kw)*Cin + cin; column n*H*W + h*W + w.
    xc = jnp.transpose(x_nchw, (1, 0, 2, 3))                       # (Cin, N, H, W)
    xp = jnp.pad(xc, ((0, 0), (0, 0), (1, 1), (1, 1)))             # (Cin, N, H+2, W+2)
    taps = jnp.stack([xp[:, :, kh:kh + H, kw:kw + W]
                      for kh in range(3) for kw in range(3)], axis=0)  # (9, Cin, N, H, W)
    at = taps.reshape(K, N * HW)

    bc = b_conv.reshape(Cout, 1)
    bfc = b_fc_p.reshape(1, Dp)

    out_p = pl.pallas_call(
        _fused_forward_kernel,
        out_shape=jax.ShapeDtypeStruct((N, Dp), x_nchw.dtype),
        # No grid: single invocation, whole arrays resident in VMEM (~1.1 MB total),
        # no double-buffering / pipeline scaffolding.
        in_specs=[pl.BlockSpec(memory_space=pltpu.MemorySpace.VMEM)] * 5,
        out_specs=pl.BlockSpec(memory_space=pltpu.MemorySpace.VMEM),
    )(at, wc_s, bc, wfc3p, bfc)

    return out_p[:, :dout]


_generic_quant_forward_jit = jax.jit(_generic_quant_forward, static_argnames=("dout",))


# ---------------- GenericQuantModule equivalent ----------------

class GenericQuantModulePallas:
    """forward(x) == `for module in self.features: x = module(x)` for the pipeline
    [QuantIdentity, QuantConv2d(3x3, pad=1), QuantReLU, Flatten, QuantLinear]."""

    def __init__(self, cin=4, cout=8, hw=16, dout=32, key=None):
        if key is None:
            key = jax.random.PRNGKey(0)
        k1, k2, k3, k4 = jax.random.split(key, 4)
        self.cin, self.cout, self.hw, self.dout = cin, cout, hw, dout

        # PyTorch-layout parameters (used by the pure-JAX reference).
        self.w_conv_oihw = jax.random.normal(k1, (cout, cin, 3, 3), jnp.float32) * 0.1
        self.b_conv = jax.random.normal(k2, (cout,), jnp.float32) * 0.1
        f = cout * hw * hw
        self.w_fc = jax.random.normal(k3, (dout, f), jnp.float32) * (1.0 / jnp.sqrt(f))
        self.b_fc = jax.random.normal(k4, (dout,), jnp.float32) * 0.1

        # Kernel-layout parameters (permuted / scaled / padded once at init).
        # Conv weight: (Cout, Cin, KH, KW) -> (Cout, KH*KW*Cin), tap-major / cin-minor,
        # with the activation-quant scale folded in.
        wcT = jnp.transpose(self.w_conv_oihw, (0, 2, 3, 1)).reshape(cout, 9 * cin)
        self.wc_s = wcT * ACT_SCALE
        # FC weight: (Dout, Cout*H*W) in PyTorch flatten (NCHW) order -> (Cout, H*W, Dout),
        # with Dout zero-padded to a lane-dense multiple of 128.
        self.dout_padded = ((dout + 127) // 128) * 128
        wfc3 = jnp.transpose(self.w_fc.reshape(dout, cout, hw * hw), (1, 2, 0))
        self.wfc3p = jnp.pad(wfc3, ((0, 0), (0, 0), (0, self.dout_padded - dout)))
        self.b_fc_p = jnp.pad(self.b_fc, (0, self.dout_padded - dout))

    def forward(self, x_nchw):
        return _generic_quant_forward_jit(
            x_nchw, self.wc_s, self.b_conv, self.wfc3p, self.b_fc_p, dout=self.dout)


def forward_reference(model, x_nchw):
    """Pure-JAX reference mirroring the PyTorch NCHW semantics."""
    xq = jnp.clip(jnp.round(x_nchw / ACT_SCALE), -128.0, 127.0) * ACT_SCALE
    y = lax.conv_general_dilated(
        xq, model.w_conv_oihw, (1, 1), "SAME",
        dimension_numbers=("NCHW", "OIHW", "NCHW"))
    y = jnp.maximum(y + model.b_conv[None, :, None, None], 0.0)
    yf = y.reshape(y.shape[0], -1)
    return yf @ model.w_fc.T + model.b_fc[None, :]


if __name__ == "__main__":
    root = jax.random.PRNGKey(0)
    k_in, k_model = jax.random.split(root)
    x = jax.random.normal(k_in, (2, 4, 16, 16), jnp.float32)  # NCHW, like PyTorch

    model = GenericQuantModulePallas(cin=4, cout=8, hw=16, dout=32, key=k_model)

    out = model.forward(x)
    out = jax.block_until_ready(out)

    ref = forward_reference(model, x)
    assert out.shape == (2, 32), out.shape
    assert jnp.allclose(out, ref, atol=1e-3, rtol=1e-3), float(jnp.max(jnp.abs(out - ref)))

    print("KERNEL_OK")
</pallas_src>

<mosaic_0001>
module attributes {stable_mosaic.version = 11 : i64} {
  func.func @_fused_forward_kernel(%arg0: memref<36x512xf32, #tpu.memory_space<vmem>>, %arg1: memref<8x36xf32, #tpu.memory_space<vmem>>, %arg2: memref<8x1xf32, #tpu.memory_space<vmem>>, %arg3: memref<8x256x128xf32, #tpu.memory_space<vmem>>, %arg4: memref<1x128xf32, #tpu.memory_space<vmem>>, %arg5: memref<2x128xf32, #tpu.memory_space<vmem>>) attributes {dimension_semantics = [], scalar_prefetch = 0 : i64, scratch_operands = 0 : i64, tpu.core_type = #tpu.core_type<tc>} {
    %c0 = arith.constant 0 : index
    %c0_0 = arith.constant 0 : index
    %0 = vector.load %arg0[%c0, %c0_0] : memref<36x512xf32, #tpu.memory_space<vmem>>, vector<36x512xf32>
    %cst = arith.constant 5.000000e-02 : f32
    %1 = vector.broadcast %cst : f32 to vector<36x512xf32>
    %2 = arith.divf %0, %1 : vector<36x512xf32>
    %3 = math.roundeven %2 : vector<36x512xf32>
    %cst_1 = arith.constant -1.280000e+02 : f32
    %cst_2 = arith.constant 1.270000e+02 : f32
    %4 = vector.broadcast %cst_1 : f32 to vector<36x512xf32>
    %5 = arith.maximumf %4, %3 : vector<36x512xf32>
    %6 = vector.broadcast %cst_2 : f32 to vector<36x512xf32>
    %7 = arith.minimumf %6, %5 : vector<36x512xf32>
    %c0_3 = arith.constant 0 : index
    %c0_4 = arith.constant 0 : index
    %8 = vector.load %arg1[%c0_3, %c0_4] : memref<8x36xf32, #tpu.memory_space<vmem>>, vector<8x36xf32>
    %cst_5 = arith.constant dense<0.000000e+00> : vector<8x512xf32>
    %9 = tpu.matmul %8, %7, %cst_5 {dimension_numbers = #tpu.dot_dimension_numbers<[1], [0], [0], [1], [0, 0, 1, 1], [], []>} : vector<8x36xf32>, vector<36x512xf32>, vector<8x512xf32> -> vector<8x512xf32>
    %c0_6 = arith.constant 0 : index
    %c0_7 = arith.constant 0 : index
    %10 = vector.load %arg2[%c0_6, %c0_7] : memref<8x1xf32, #tpu.memory_space<vmem>>, vector<8x1xf32>
    %11 = vector.broadcast %10 : vector<8x1xf32> to vector<8x512xf32>
    %12 = arith.addf %9, %11 : vector<8x512xf32>
    %cst_8 = arith.constant 0.000000e+00 : f32
    %13 = vector.broadcast %cst_8 : f32 to vector<8x512xf32>
    %14 = arith.maximumf %12, %13 : vector<8x512xf32>
    %15 = vector.shape_cast %14 : vector<8x512xf32> to vector<8x2x256xf32>
    %c0_9 = arith.constant 0 : index
    %c0_10 = arith.constant 0 : index
    %c0_11 = arith.constant 0 : index
    %16 = vector.load %arg3[%c0_9, %c0_10, %c0_11] : memref<8x256x128xf32, #tpu.memory_space<vmem>>, vector<8x256x128xf32>
    "tpu.trace_start"() <{level = 10 : i32, message = "cnp,cpd->cnd"}> : () -> ()
    %cst_12 = arith.constant dense<0.000000e+00> : vector<8x2x128xf32>
    %17 = tpu.matmul %15, %16, %cst_12 {dimension_numbers = #tpu.dot_dimension_numbers<[2], [1], [1], [2], [0, 0, 0, 1, 1, 2], [0], [0]>} : vector<8x2x256xf32>, vector<8x256x128xf32>, vector<8x2x128xf32> -> vector<8x2x128xf32>
    "tpu.trace_stop"() : () -> ()
    %cst_13 = arith.constant dense<0.000000e+00> : vector<2x128xf32>
    %18 = vector.multi_reduction <add>, %17, %cst_13 [0] : vector<8x2x128xf32> to vector<2x128xf32>
    %c0_14 = arith.constant 0 : index
    %c0_15 = arith.constant 0 : index
    %19 = vector.load %arg4[%c0_14, %c0_15] : memref<1x128xf32, #tpu.memory_space<vmem>>, vector<1x128xf32>
    %20 = vector.broadcast %19 : vector<1x128xf32> to vector<2x128xf32>
    %21 = arith.addf %18, %20 : vector<2x128xf32>
    %c0_16 = arith.constant 0 : index
    %c0_17 = arith.constant 0 : index
    %22 = vector.load %arg5[%c0_16, %c0_17] : memref<2x128xf32, #tpu.memory_space<vmem>>, vector<2x128xf32>
    tpu.vector_store %arg5[%c0_16, %c0_17], %21 {strides = array<i32>} : memref<2x128xf32, #tpu.memory_space<vmem>>, vector<2x128xf32>,
    return
  }
}

</mosaic_0001>

<bundles_post_ra>
// kernel: _generic_quant_forward.1
= control target key start
LH: loop header
LB: loop body
LE: loop exit
PB: predicated region body
PF: predicated region fallthrough
CT: control target
= control target key end

     0   :  { %vm133_vm1 = vcmask 1043456   ;;  %s2847_s0 = inlined_call_operand.vmem [shape: f32[36,512], index: 0, kind: input, shape index: {}]   ;;  %s2848_s1 = inlined_call_operand.vmem [shape: f32[8,36], index: 1, kind: input, shape index: {}]   ;;  %s2849_s2 = inlined_call_operand.vmem [shape: f32[8,1], index: 2, kind: input, shape index: {}]   ;;  %s2850_s3 = inlined_call_operand.vmem [shape: f32[8,256,128], index: 3, kind: input, shape index: {}]   ;;  %s2851_s4 = inlined_call_operand.vmem [shape: f32[1,128], index: 4, kind: input, shape index: {}]   ;;  %s2852_s5 = inlined_call_operand.hbm [shape: f32[2,128], index: 5, kind: output, shape index: {}]  }
   0x1   :  { %v38_v0 = vld [vmem:[%s2847_s0 + $0x88] sm:$0xf]  ;;  %v40_v1 = vld [vmem:[%s2847_s0 + $0x98] sm:$0xf]  ;;  %v37_v5 = vld [vmem:[%s2847_s0 + $0x80] sm:$0xf] }
   0x2   :  { %v34_v2 = vld [vmem:[%s2847_s0 + $0x68] sm:$0xff]  ;;  %v59_v3 = vmul.f32 20.0, %v38_v0  ;;  %v61_v4 = vmul.f32 20.0, %v40_v1  ;;  %v39_v6 = vld [vmem:[%s2847_s0 + $0x90] sm:$0xf]  ;;  %v58_v7 = vmul.f32 20.0, %v37_v5 }
   0x3   :  { %v60_v8 = vmul.f32 20.0, %v39_v6  ;;  %v55_v12 = vmul.f32 20.0, %v34_v2  ;;  %v36_v29 = vld [vmem:[%s2847_s0 + $0x78] sm:$0xff]  ;;  %v33_v34 = vld [vmem:[%s2847_s0 + $0x60] sm:$0xff]  ;;  %v35_v47 = vld [vmem:[%s2847_s0 + $0x70] sm:$0xff] }
   0x4   :  { %v1702_v9 = vand.u32 2147483647, %v59_v3  ;;  %v1704_v10 = vcvt.f32.s32 %v59_v3  ;;  %v1718_v11 = vand.u32 2147483647, %v61_v4  ;;  %v1707_v13 = vand.u32 2147483648, %v59_v3 }
   0x5   :  { %v1720_v14 = vcvt.f32.s32 %v61_v4  ;;  %v1694_v15 = vand.u32 2147483647, %v58_v7  ;;  %v1696_v16 = vcvt.f32.s32 %v58_v7  ;;  %v1723_v20 = vand.u32 2147483648, %v61_v4 }
   0x6   :  { %vm1804_vm0 = vcmp.lt.f32.partialorder %v1702_v9, 8388608.0  ;;  %v1705_v18 = vcvt.s32.f32 %v1704_v10  ;;  %vm1808_vm2 = vcmp.lt.f32.partialorder %v1718_v11, 8388608.0  ;;  %v1699_v23 = vand.u32 2147483648, %v58_v7  ;;  %v32_v9 = vld [vmem:[%s2847_s0 + $0x58] sm:$0xff] }
   0x7   :  { %v1721_v21 = vcvt.s32.f32 %v1720_v14  ;;  %v1697_v22 = vcvt.s32.f32 %v1696_v16  ;;  %v1710_v24 = vand.u32 2147483647, %v60_v8  ;;  %vm1812_vm3 = vcmp.lt.f32.partialorder %v1694_v15, 8388608.0  ;;  %v29_v14 = vld [vmem:[%s2847_s0 + $0x40] sm:$0xff]  ;;  %v31_v15 = vld [vmem:[%s2847_s0 + $0x50] sm:$0xff] }
   0x8   :  { %v1706_v25 = vand.u32 2147483647, %v1705_v18  ;;  %v1712_v27 = vcvt.f32.s32 %v60_v8  ;;  %v1670_v28 = vand.u32 2147483647, %v55_v12  ;;  %v1715_v32 = vand.u32 2147483648, %v60_v8 }
   0x9   :  { %v1722_v30 = vand.u32 2147483647, %v1721_v21  ;;  %v1698_v31 = vand.u32 2147483647, %v1697_v22  ;;  %v1672_v33 = vcvt.f32.s32 %v55_v12  ;;  %vm1822_vm4 = vcmp.lt.f32.partialorder %v1710_v24, 8388608.0  ;;  %v26_v24 = vld [vmem:[%s2847_s0 + $0x28] sm:$0xff] }
   0xa   :  { %v1708_v35 = vor.u32 %v1707_v13, %v1706_v25  ;;  %v1713_v37 = vcvt.s32.f32 %v1712_v27  ;;  %v1675_v38 = vand.u32 2147483648, %v55_v12  ;;  %v57_v42 = vmul.f32 20.0, %v36_v29 }
   0xb   :  { %v1724_v39 = vor.u32 %v1723_v20, %v1722_v30  ;;  %v1700_v40 = vor.u32 %v1699_v23, %v1698_v31  ;;  %v1673_v41 = vcvt.s32.f32 %v1672_v33  ;;  %vm1828_vm5 = vcmp.lt.f32.partialorder %v1670_v28, 8388608.0 }
   0xc   :  { %v1709_v43 = vsel %vm1804_vm0, %v1708_v35, %v59_v3  ;;  %v1714_v44 = vand.u32 2147483647, %v1713_v37  ;;  %v1832_v46 = vmul.f32 20.0, %v33_v34  ;;  %v1686_v55 = vand.u32 2147483647, %v57_v42 }
   0xd   :  { %v99_v48 = vmax.f32 %v1709_v43, -128.0  ;;  %v1725_v49 = vsel %vm1808_vm2, %v1724_v39, %v61_v4  ;;  %v1701_v50 = vsel %vm1812_vm3, %v1700_v40, %v58_v7  ;;  %v1674_v51 = vand.u32 2147483647, %v1673_v41 }
   0xe   :  { %v101_v52 = vmax.f32 %v1725_v49, -128.0  ;;  %v98_v53 = vmax.f32 %v1701_v50, -128.0  ;;  %v1716_v54 = vor.u32 %v1715_v32, %v1714_v44  ;;  %v1688_v58 = vcvt.f32.s32 %v57_v42 }
   0xf   :  { %v119_v56 = vmin.f32 %v99_v48, 127.0  ;;  %v1676_v57 = vor.u32 %v1675_v38, %v1674_v51  ;;  %v56_v59 = vmul.f32 20.0, %v35_v47  ;;  %v1691_v63 = vand.u32 2147483648, %v57_v42 }
  0x10   :  { %v121_v60 = vmin.f32 %v101_v52, 127.0  ;;  %v118_v61 = vmin.f32 %v98_v53, 127.0  ;;  %v1717_v62 = vsel %vm1822_vm4, %v1716_v54, %v60_v8  ;;  %v1689_v2 = vcvt.s32.f32 %v1688_v58  ;;  %v30_v8 = vld [vmem:[%s2847_s0 + $0x48] sm:$0xff] }
  0x11   :  { %1279 = vmatprep.subr.msk.mxu0 %vm133_vm1, %v119_v56  ;;  %v100_v0 = vmax.f32 %v1717_v62, -128.0  ;;  %v1677_v1 = vsel %vm1828_vm5, %v1676_v57, %v55_v12  ;;  %v1662_v3 = vand.u32 2147483647, %v1832_v46  ;;  %vm1849_vm6 = vcmp.lt.f32.partialorder %v1686_v55, 8388608.0 }
  0x12   :  { %1282 = vmatprep.subr.msk.mxu1 %vm133_vm1, %v121_v60  ;;  %1280 = vmatpush1.msk.msra.mxu0 %vm133_vm1, %v118_v61  ;;  %v95_v4 = vmax.f32 %v1677_v1, -128.0  ;;  %v1664_v6 = vcvt.f32.s32 %v1832_v46  ;;  %v1678_v7 = vand.u32 2147483647, %v56_v59  ;;  %v1690_v11 = vand.u32 2147483647, %v1689_v2 }
  0x13   :  { %v120_v10 = vmin.f32 %v100_v0, 127.0  ;;  %v1667_v12 = vand.u32 2147483648, %v1832_v46  ;;  %v1680_v13 = vcvt.f32.s32 %v56_v59  ;;  %vm1867_vm7 = vcmp.lt.f32.partialorder %v1662_v3, 8388608.0 }
  0x14   :  { %v115_v16 = vmin.f32 %v95_v4, 127.0  ;;  %v1665_v18 = vcvt.s32.f32 %v1664_v6  ;;  %v1683_v19 = vand.u32 2147483648, %v56_v59  ;;  %v1692_v20 = vor.u32 %v1691_v63, %v1690_v11 }
  0x15   :  { %1283 = vmatpush1.msk.msra.mxu1 %vm133_vm1, %v120_v10  ;;  %v1681_v21 = vcvt.s32.f32 %v1680_v13  ;;  %v51_v22 = vmul.f32 20.0, %v30_v8  ;;  %v53_v23 = vmul.f32 20.0, %v32_v9  ;;  %vm1875_vm8 = vcmp.lt.f32.partialorder %v1678_v7, 8388608.0 }
  0x16   :  { %170 = vmatprep.subr.mxu0 %v115_v16  ;;  %v1666_v25 = vand.u32 2147483647, %v1665_v18  ;;  %v1879_v27 = vmul.f32 20.0, %v29_v14  ;;  %v1881_v28 = vmul.f32 20.0, %v31_v15  ;;  %v1693_v29 = vsel %vm1849_vm6, %v1692_v20, %v57_v42 }
  0x17   :  { %v1682_v30 = vand.u32 2147483647, %v1681_v21  ;;  %v1638_v31 = vand.u32 2147483647, %v51_v22  ;;  %v1640_v32 = vcvt.f32.s32 %v51_v22  ;;  %v97_v33 = vmax.f32 %v1693_v29, -128.0 }
  0x18   :  { %v1668_v34 = vor.u32 %v1667_v12, %v1666_v25  ;;  %v1654_v35 = vand.u32 2147483647, %v53_v23  ;;  %v1885_v36 = vmul.f32 20.0, %v26_v24  ;;  %v1643_v39 = vand.u32 2147483648, %v51_v22 }
  0x19   :  { %v1684_v37 = vor.u32 %v1683_v19, %v1682_v30  ;;  %v1641_v38 = vcvt.s32.f32 %v1640_v32  ;;  %v1656_v40 = vcvt.f32.s32 %v53_v23 }
  0x1a   :  { %10 = vsyncpa [#allocation3], 0  ;;  %v117_v41 = vmin.f32 %v97_v33, 127.0  ;;  %v1669_v43 = vsel %vm1867_vm7, %v1668_v34, %v1832_v46  ;;  %vm1890_vm9 = vcmp.lt.f32.partialorder %v1638_v31, 8388608.0  ;;  %v1659_v44 = vand.u32 2147483648, %v53_v23  ;;  %v28_v61 = vld [vmem:[%s2847_s0 + $0x38] sm:$0xff] }
  0x1b   :  { %v94_v45 = vmax.f32 %v1669_v43, -128.0  ;;  %v1685_v47 = vsel %vm1875_vm8, %v1684_v37, %v56_v59  ;;  %v1642_v48 = vand.u32 2147483647, %v1641_v38  ;;  %v1657_v49 = vcvt.s32.f32 %v1656_v40  ;;  %v25_v18 = vld [vmem:[%s2847_s0 + $0x20] sm:$0xff]  ;;  %v27_v19 = vld [vmem:[%s2847_s0 + $0x30] sm:$0xff]  ;;  %v22_v30 = vld [vmem:[%s2847_s0 + $0x8] sm:$0xff] }
  0x1c   :  { %241 = vmatprep.subr.mxu1 %v117_v41  ;;  %v96_v50 = vmax.f32 %v1685_v47, -128.0  ;;  %vm1896_vm10 = vcmp.lt.f32.partialorder %v1654_v35, 8388608.0  ;;  %v1630_v52 = vand.u32 2147483647, %v1879_v27  ;;  %v1632_v46 = vcvt.f32.s32 %v1879_v27  ;;  %v24_v51 = vld [vmem:[%s2847_s0 + $0x18] sm:$0xff]  ;;  %s1758_s18 = smov [#allocation2]  }
  0x1d   :  { %v114_v53 = vmin.f32 %v94_v45, 127.0  ;;  %v1644_v54 = vor.u32 %v1643_v39, %v1642_v48  ;;  %v1658_v55 = vand.u32 2147483647, %v1657_v49  ;;  %v1646_v56 = vand.u32 2147483647, %v1881_v28  ;;  %v455_v48 = vld [vmem:[%s2850_s3 + $0xf8] sm:$0xff] }
  0x1e   :  { %v116_v57 = vmin.f32 %v96_v50, 127.0  ;;  %v1633_v58 = vcvt.s32.f32 %v1632_v46  ;;  %v1635_v59 = vand.u32 2147483648, %v1879_v27  ;;  %v1648_v60 = vcvt.f32.s32 %v1881_v28  ;;  %s1271_s19 = sshll.u32 %s1758_s18, 4  ;;  %s1272_s19 = int_to_ptr.vmem [resolvable:$true] %s1271_s19 }
  0x1f   :  { %171 = vmatpush1.msra.mxu0 %v114_v53  ;;  %v1645_v62 = vsel %vm1890_vm9, %v1644_v54, %v51_v22  ;;  %v1660_v63 = vor.u32 %v1659_v44, %v1658_v55  ;;  %vm1910_vm11 = vcmp.lt.f32.partialorder %v1630_v52, 8388608.0  ;;  %v1651_v1 = vand.u32 2147483648, %v1881_v28  ;;  %v21_v54 = vld [vmem:[%s2847_s0] sm:$0xff]  ;;  %s1732_s20 = scalar_lea.vmem %s1272_s19, 32  ;;  %p1737_p1 = scmp.lt.s32.totalorder %s1272_s19, %s1272_s19 }
  0x20   :  { %242 = vmatpush1.msra.mxu1 %v116_v57  ;;  %v91_v2 = vmax.f32 %v1645_v62, -128.0  ;;  %v1634_v3 = vand.u32 2147483647, %v1633_v58  ;;  %v1649_v4 = vcvt.s32.f32 %v1648_v60  ;;  %v1606_v5 = vand.u32 2147483647, %v1885_v36  ;;  %p1733_p0 = scmp.ne.s32.totalorder %s1272_s19, %s1732_s20  ;;  %p1738_p2 = scmp.lt.s32.totalorder %s1732_s20, %s1732_s20 }
  0x21   :  { %v1661_v6 = vsel %vm1896_vm10, %v1660_v63, %v53_v23  ;;  %vm1918_vm12 = vcmp.lt.f32.partialorder %v1646_v56, 8388608.0  ;;  %v1608_v8 = vcvt.f32.s32 %v1885_v36  ;;  %v49_v9 = vmul.f32 20.0, %v28_v61 }
  0x22   :  { %v111_v10 = vmin.f32 %v91_v2, 127.0  ;;  %v93_v11 = vmax.f32 %v1661_v6, -128.0  ;;  %v1636_v12 = vor.u32 %v1635_v59, %v1634_v3  ;;  %v1650_v13 = vand.u32 2147483647, %v1649_v4  ;;  %v486_v59 = vld [vmem:[%s2850_s3 + $0x1f0] sm:$0xff]  ;;  %p1739_p3 = por %p1738_p2, %p1737_p1 }
  0x23   :  { %v1609_v14 = vcvt.s32.f32 %v1608_v8  ;;  %v1611_v15 = vand.u32 2147483648, %v1885_v36  ;;  %v1622_v16 = vand.u32 2147483647, %v49_v9  ;;  %v1624_v17 = vcvt.f32.s32 %v49_v9  ;;  %v434_v4 = vld [vmem:[%s2850_s3 + $0x50] sm:$0xff] }
  0x24   :  { %172 = vmatprep.subr.mxu0 %v111_v10  ;;  %v113_v20 = vmin.f32 %v93_v11, 127.0  ;;  %v1637_v21 = vsel %vm1910_vm11, %v1636_v12, %v1879_v27  ;;  %v1652_v22 = vor.u32 %v1651_v1, %v1650_v13  ;;  %vm1933_vm13 = vcmp.lt.f32.partialorder %v1606_v5, 8388608.0  ;;  %p1740_p4 = pnand %p1739_p3, %p1733_p0 }
  0x25   :  { %v90_v24 = vmax.f32 %v1637_v21, -128.0  ;;  %v1610_v25 = vand.u32 2147483647, %v1609_v14  ;;  %v1625_v26 = vcvt.s32.f32 %v1624_v17  ;;  %v1627_v29 = vand.u32 2147483648, %v49_v9 }
  0x26   :  { %243 = vmatprep.subr.mxu1 %v113_v20  ;;  %v1653_v31 = vsel %vm1918_vm12, %v1652_v22, %v1881_v28  ;;  %vm1943_vm14 = vcmp.lt.f32.partialorder %v1622_v16, 8388608.0  ;;  %v46_v32 = vmul.f32 20.0, %v25_v18  ;;  %v48_v33 = vmul.f32 20.0, %v27_v19  ;;  %v446_v18 = vld [vmem:[%s2850_s3 + $0xb0] sm:$0xff] }
  0x27   :  { %v110_v34 = vmin.f32 %v90_v24, 127.0  ;;  %v92_v35 = vmax.f32 %v1653_v31, -128.0  ;;  %v1612_v37 = vor.u32 %v1611_v15, %v1610_v25  ;;  %v1626_v38 = vand.u32 2147483647, %v1625_v26  ;;  %v23_v15 = vld [vmem:[%s2847_s0 + $0x10] sm:$0xff] }
  0x28   :  { %v1598_v39 = vand.u32 2147483647, %v46_v32  ;;  %v1600_v40 = vcvt.f32.s32 %v46_v32  ;;  %v1614_v41 = vand.u32 2147483647, %v48_v33  ;;  %v43_v43 = vmul.f32 20.0, %v22_v30  ;;  %v123_v30 = vld [vmem:[%s2849_s2] sm:$0xff] }
  0x29   :  { %173 = vmatpush1.msra.mxu0 %v110_v34  ;;  %v112_v42 = vmin.f32 %v92_v35, 127.0  ;;  %v1613_v28 = vsel %vm1933_vm13, %v1612_v37, %v1885_v36  ;;  %v1628_v44 = vor.u32 %v1627_v29, %v1626_v38  ;;  %v1616_v45 = vcvt.f32.s32 %v48_v33 }
  0x2a   :  { %v87_v47 = vmax.f32 %v1613_v28, -128.0  ;;  %vm1950_vm15 = vcmp.lt.f32.partialorder %v1598_v39, 8388608.0  ;;  %v1601_v49 = vcvt.s32.f32 %v1600_v40  ;;  %v1603_v50 = vand.u32 2147483648, %v46_v32 }
  0x2b   :  { %244 = vmatpush1.msra.mxu1 %v112_v42  ;;  %v1629_v52 = vsel %vm1943_vm14, %v1628_v44, %v49_v9  ;;  %v1617_v46 = vcvt.s32.f32 %v1616_v45  ;;  %v1619_v53 = vand.u32 2147483648, %v48_v33  ;;  %v1574_v36 = vand.u32 2147483647, %v43_v43 }
  0x2c   :  { %v107_v55 = vmin.f32 %v87_v47, 127.0  ;;  %v89_v56 = vmax.f32 %v1629_v52, -128.0  ;;  %v1602_v57 = vand.u32 2147483647, %v1601_v49  ;;  %v1576_v58 = vcvt.f32.s32 %v43_v43  ;;  %v122_v47 = vld [vmem:[%s2848_s1] sm:$0xff] }
  0x2d   :  { %vm1962_vm0 = vcmp.lt.f32.partialorder %v1614_v41, 8388608.0  ;;  %v1618_v60 = vand.u32 2147483647, %v1617_v46  ;;  %v1579_v61 = vand.u32 2147483648, %v43_v43  ;;  %v45_v62 = vmul.f32 20.0, %v24_v51  ;;  %v454_v51 = vld [vmem:[%s2850_s3 + $0xf0] sm:$0xff] }
  0x2e   :  { %174 = vmatprep.subr.mxu0 %v107_v55  ;;  %v109_v63 = vmin.f32 %v89_v56, 127.0  ;;  %v1604_v0 = vor.u32 %v1603_v50, %v1602_v57  ;;  %v1577_v1 = vcvt.s32.f32 %v1576_v58  ;;  %v42_v2 = vmul.f32 20.0, %v21_v54  ;;  %v439_v50 = vld [vmem:[%s2850_s3 + $0x78] sm:$0xff]  ;;  %v438_v46 = vld [vmem:[%s2850_s3 + $0x70] sm:$0xff]  ;;  %v437_v54 = vld [vmem:[%s2850_s3 + $0x68] sm:$0xff] }
  0x2f   :  { %v1620_v3 = vor.u32 %v1619_v53, %v1618_v60  ;;  %vm1966_vm1 = vcmp.lt.f32.partialorder %v1574_v36, 8388608.0  ;;  %v1590_v5 = vand.u32 2147483647, %v45_v62  ;;  %v1592_v6 = vcvt.f32.s32 %v45_v62  ;;  %v453_v36 = vld [vmem:[%s2850_s3 + $0xe8] sm:$0xff]  ;;  %v487_v56 = vld [vmem:[%s2850_s3 + $0x1f8] sm:$0xff]  ;;  %v452_v58 = vld [vmem:[%s2850_s3 + $0xe0] sm:$0xff] }
  0x30   :  { %245 = vmatprep.subr.mxu1 %v109_v63  ;;  %v1605_v7 = vsel %vm1950_vm15, %v1604_v0, %v46_v32  ;;  %v1578_v8 = vand.u32 2147483647, %v1577_v1  ;;  %v1595_v9 = vand.u32 2147483648, %v45_v62  ;;  %v1568_v10 = vcvt.f32.s32 %v42_v2  ;;  %v471_v57 = vld [vmem:[%s2850_s3 + $0x178] sm:$0xff]  ;;  %v436_v60 = vld [vmem:[%s2850_s3 + $0x60] sm:$0xff]  ;;  %v485_v63 = vld [vmem:[%s2850_s3 + $0x1e8] sm:$0xff] }
  0x31   :  { %v86_v11 = vmax.f32 %v1605_v7, -128.0  ;;  %v1621_v12 = vsel %vm1962_vm0, %v1620_v3, %v48_v33  ;;  %v1593_v13 = vcvt.s32.f32 %v1592_v6  ;;  %v1566_v14 = vand.u32 2147483647, %v42_v2  ;;  %v435_v0 = vld [vmem:[%s2850_s3 + $0x58] sm:$0xff]  ;;  %v469_v1 = vld [vmem:[%s2850_s3 + $0x168] sm:$0xff]  ;;  %v484_v3 = vld [vmem:[%s2850_s3 + $0x1e0] sm:$0xff] }
  0x32   :  { %v88_v16 = vmax.f32 %v1621_v12, -128.0  ;;  %v1580_v17 = vor.u32 %v1579_v61, %v1578_v8  ;;  %vm1977_vm2 = vcmp.lt.f32.partialorder %v1590_v5, 8388608.0  ;;  %v1569_v19 = vcvt.s32.f32 %v1568_v10  ;;  %v470_v61 = vld [vmem:[%s2850_s3 + $0x170] sm:$0xff]  ;;  %v468_v5 = vld [vmem:[%s2850_s3 + $0x160] sm:$0xff]  ;;  %v449_v6 = vld [vmem:[%s2850_s3 + $0xc8] sm:$0xff] }
  0x33   :  { %v106_v20 = vmin.f32 %v86_v11, 127.0  ;;  %v1594_v21 = vand.u32 2147483647, %v1593_v13  ;;  %v1571_v22 = vand.u32 2147483648, %v42_v2  ;;  %v1754_v26 = vmov 0.0   ;;  %v483_v7 = vld [vmem:[%s2850_s3 + $0x1d8] sm:$0xff] }
  0x34   :  { %v108_v23 = vmin.f32 %v88_v16, 127.0  ;;  %v1581_v24 = vsel %vm1966_vm1, %v1580_v17, %v43_v43  ;;  %v1570_v25 = vand.u32 2147483647, %v1569_v19  ;;  %210 = vmatprep.mubr.f32.mxu0 %v1754_v26  ;;  %v44_v29 = vmul.f32 20.0, %v23_v15  ;;  %281 = vmatprep.mubr.f32.mxu1 %v1754_v26  ;;  %v433_v8 = vld [vmem:[%s2850_s3 + $0x48] sm:$0xff]  ;;  %v448_v10 = vld [vmem:[%s2850_s3 + $0xc0] sm:$0xff] }
  0x35   :  { %175 = vmatpush1.msra.mxu0 %v106_v20  ;;  %v83_v31 = vmax.f32 %v1581_v24, -128.0  ;;  %v1596_v27 = vor.u32 %v1595_v9, %v1594_v21  ;;  %vm1567_vm3 = vcmp.lt.f32.partialorder %v1566_v14, 8388608.0  ;;  %v1755_v34 = vmov 0   ;;  %v467_v9 = vld [vmem:[%s2850_s3 + $0x158] sm:$0xff]  ;;  %v482_v11 = vld [vmem:[%s2850_s3 + $0x1d0] sm:$0xff]  ;;  %v432_v12 = vld [vmem:[%s2850_s3 + $0x40] sm:$0xff] }
  0x36   :  { %246 = vmatpush1.msra.mxu1 %v108_v23  ;;  %v1572_v32 = vor.u32 %v1571_v22, %v1570_v25  ;;  %v1584_v33 = vcvt.f32.s32 %v44_v29  ;;  %1731 = vset.pattern.permute.xlu0 %v1755_v34  ;;  %v1582_v38 = vand.u32 2147483647, %v44_v29  ;;  %v1587_v43 = vand.u32 2147483648, %v44_v29  ;;  %v466_v13 = vld [vmem:[%s2850_s3 + $0x150] sm:$0xff]  ;;  %v447_v14 = vld [vmem:[%s2850_s3 + $0xb8] sm:$0xff]  ;;  %v481_v15 = vld [vmem:[%s2850_s3 + $0x1c8] sm:$0xff] }
  0x37   :  { %v103_v35 = vmin.f32 %v83_v31, 127.0  ;;  %v1597_v37 = vsel %vm1977_vm2, %v1596_v27, %v45_v62  ;;  %126 = vperm.xlu0 %1731, %v123_v30   ;;  %vm129_vm5 = vcmask 293888   ;;  %v451_v62 = vld [vmem:[%s2850_s3 + $0xd8] sm:$0xff]  ;;  %v465_v17 = vld [vmem:[%s2850_s3 + $0x148] sm:$0xff]  ;;  %v480_v19 = vld [vmem:[%s2850_s3 + $0x1c0] sm:$0xff]  ;;  %vm1240_vm6 = vcmask 1041408  }
  0x38   :  { %v85_v39 = vmax.f32 %v1597_v37, -128.0  ;;  %v1573_v40 = vsel %vm1567_vm3, %v1572_v32, %v42_v2  ;;  %v1585_v41 = vcvt.s32.f32 %v1584_v33  ;;  %vm1583_vm4 = vcmp.lt.f32.partialorder %v1582_v38, 8388608.0  ;;  %v450_v2 = vld [vmem:[%s2850_s3 + $0xd0] sm:$0xff]  ;;  %v431_v16 = vld [vmem:[%s2850_s3 + $0x38] sm:$0xff]  ;;  %v464_v20 = vld [vmem:[%s2850_s3 + $0x140] sm:$0xff] }
  0x39   :  { %176 = vmatprep.subr.mxu0 %v103_v35  ;;  %v82_v42 = vmax.f32 %v1573_v40, -128.0  ;;  %v479_v21 = vld [vmem:[%s2850_s3 + $0x1b8] sm:$0xff]  ;;  %v430_v22 = vld [vmem:[%s2850_s3 + $0x30] sm:$0xff]  ;;  %v445_v24 = vld [vmem:[%s2850_s3 + $0xa8] sm:$0xff] }
  0x3a   :  { %v105_v28 = vmin.f32 %v85_v39, 127.0  ;;  %v1586_v44 = vand.u32 2147483647, %v1585_v41  ;;  %v463_v23 = vld [vmem:[%s2850_s3 + $0x138] sm:$0xff]  ;;  %v478_v25 = vld [vmem:[%s2850_s3 + $0x1b0] sm:$0xff]  ;;  %v444_v31 = vld [vmem:[%s2850_s3 + $0xa0] sm:$0xff] }
  0x3b   :  { %v102_v45 = vmin.f32 %v82_v42, 127.0  ;;  %v462_v30 = vld [vmem:[%s2850_s3 + $0x130] sm:$0xff]  ;;  %v477_v27 = vld [vmem:[%s2850_s3 + $0x1a8] sm:$0xff]  ;;  %v428_v32 = vld [vmem:[%s2850_s3 + $0x20] sm:$0xff] }
  0x3c   :  { %247 = vmatprep.subr.mxu1 %v105_v28  ;;  %v1588_v49 = vor.u32 %v1587_v43, %v1586_v44  ;;  %v461_v33 = vld [vmem:[%s2850_s3 + $0x128] sm:$0xff]  ;;  %v443_v34 = vld [vmem:[%s2850_s3 + $0x98] sm:$0xff]  ;;  %v476_v35 = vld [vmem:[%s2850_s3 + $0x1a0] sm:$0xff] }
  0x3d   :  { %177 = vmatpush1.msra.mxu0 %v102_v45  ;;  %v427_v37 = vld [vmem:[%s2850_s3 + $0x18] sm:$0xff]  ;;  %v460_v38 = vld [vmem:[%s2850_s3 + $0x120] sm:$0xff]  ;;  %v442_v39 = vld [vmem:[%s2850_s3 + $0x90] sm:$0xff] }
  0x3e   :  { %v1589_v52 = vsel %vm1583_vm4, %v1588_v49, %v44_v29  ;;  %1281 = vmatmul.mubr.msk.f32.vlgmr.msra.gmra.mxu0 %vm129_vm5, %v122_v47  ;;  %1286 = vmatprep.subr.mxu0 %v455_v48  ;;  %v429_v29 = vld [vmem:[%s2850_s3 + $0x28] sm:$0xff]  ;;  %v475_v40 = vld [vmem:[%s2850_s3 + $0x198] sm:$0xff]  ;;  %v426_v41 = vld [vmem:[%s2850_s3 + $0x10] sm:$0xff] }
  0x3f   :  { %v84_v53 = vmax.f32 %v1589_v52, -128.0  ;;  %1287 = vmatpush3.msra.mxu0 %v439_v50  ;;  %v459_v43 = vld [vmem:[%s2850_s3 + $0x118] sm:$0xff]  ;;  %v441_v42 = vld [vmem:[%s2850_s3 + $0x88] sm:$0xff]  ;;  %v474_v28 = vld [vmem:[%s2850_s3 + $0x190] sm:$0xff] }
  0x40   :  { %1288 = vmatprep.subr.mxu0 %v454_v51  ;;  %v425_v44 = vld [vmem:[%s2850_s3 + $0x8] sm:$0xff]  ;;  %v458_v45 = vld [vmem:[%s2850_s3 + $0x110] sm:$0xff]  ;;  %v424_v49 = vld [vmem:[%s2850_s3] sm:$0xff] }
  0x41   :  { %v104_v55 = vmin.f32 %v84_v53, 127.0  ;;  %1289 = vmatpush3.msra.mxu0 %v438_v46  ;;  %v473_v48 = vld [vmem:[%s2850_s3 + $0x188] sm:$0xff]  ;;  %v472_v51 = vld [vmem:[%s2850_s3 + $0x180] sm:$0xff]  ;;  %v519_v52 = vld [vmem:[%s2850_s3 + $0x2f8] sm:$0xff] }
  0x42   :  { %1290 = vmatprep.subr.mxu0 %v453_v36  ;;  %v457_v50 = vld [vmem:[%s2850_s3 + $0x108] sm:$0xff]  ;;  %v456_v46 = vld [vmem:[%s2850_s3 + $0x100] sm:$0xff]  ;;  %v551_v53 = vld [vmem:[%s2850_s3 + $0x3f8] sm:$0xff]  ;;  %v1756_v36 = vmov 1983009808  }
  0x43   :  { %248 = vmatpush1.msra.mxu1 %v104_v55  ;;  %1291 = vmatpush3.msra.mxu0 %v437_v54  ;;  %v294_v54 = vunpack.c.l.s4 %v1756_v36  ;;  %v296_v55 = vlaneseq  ;;  %v531_v36 = vld [vmem:[%s2850_s3 + $0x358] sm:$0xff] }
  0x44   :  { %1284 = vmatmul.mubr.msk.f32.vlgmr.msra.gmra.mxu1 %vm129_vm5, %v122_v47  ;;  %1321 = vmatprep.subr.mxu1 %v487_v56  ;;  %v440_v47 = vld [vmem:[%s2850_s3 + $0x80] sm:$0xff] }
  0x45   :  { %1322 = vmatpush3.msra.mxu1 %v471_v57  ;;  %1292 = vmatprep.subr.mxu0 %v452_v58 }
  0x46   :  { %1323 = vmatprep.subr.mxu1 %v486_v59  ;;  %1293 = vmatpush3.msra.mxu0 %v436_v60  ;;  %v295_v59 = vunpack.c.0.s8 %v294_v54  ;;  %v297_v60 = vshrl.u32 %v296_v55, 7  ;;  %v513_v54 = vld [vmem:[%s2850_s3 + $0x2c8] sm:$0xff]  ;;  %v546_v55 = vld [vmem:[%s2850_s3 + $0x3d0] sm:$0xff] }
  0x47   :  { %1324 = vmatpush3.msra.mxu1 %v470_v61  ;;  %1294 = vmatprep.subr.mxu0 %v451_v62 }
  0x48   :  { %1325 = vmatprep.subr.mxu1 %v485_v63  ;;  %1295 = vmatpush3.msra.mxu0 %v435_v0 }
  0x49   :  { %1326 = vmatpush3.msra.mxu1 %v469_v1  ;;  %1296 = vmatprep.subr.mxu0 %v450_v2  ;;  %v2196_v1 = vsub.s32 %v295_v59, %v297_v60  ;;  %v545_v59 = vld [vmem:[%s2850_s3 + $0x3c8] sm:$0xff] }
  0x4a   :  { %1327 = vmatprep.subr.mxu1 %v484_v3  ;;  %1297 = vmatpush3.msra.mxu0 %v434_v4  ;;  %v1757_v3 = vmov 1934713408  }
  0x4b   :  { %1328 = vmatpush3.msra.mxu1 %v468_v5  ;;  %1298 = vmatprep.subr.mxu0 %v449_v6  ;;  %v325_v4 = vunpack.c.l.s4 %v1757_v3  ;;  %v528_v3 = vld [vmem:[%s2850_s3 + $0x340] sm:$0xff] }
  0x4c   :  { %1329 = vmatprep.subr.mxu1 %v483_v7  ;;  %1299 = vmatpush3.msra.mxu0 %v433_v8 }
  0x4d   :  { %1330 = vmatpush3.msra.mxu1 %v467_v9  ;;  %1300 = vmatprep.subr.mxu0 %v448_v10 }
  0x4e   :  { %1331 = vmatprep.subr.mxu1 %v482_v11  ;;  %1301 = vmatpush3.msra.mxu0 %v432_v12  ;;  %v326_v12 = vunpack.c.0.s8 %v325_v4  ;;  %v510_v4 = vld [vmem:[%s2850_s3 + $0x2b0] sm:$0xff] }
  0x4f   :  { %1332 = vmatpush3.msra.mxu1 %v466_v13  ;;  %1302 = vmatprep.subr.mxu0 %v447_v14 }
  0x50   :  { %1333 = vmatprep.subr.mxu1 %v481_v15  ;;  %1303 = vmatpush3.msra.mxu0 %v431_v16 }
  0x51   :  { %1334 = vmatpush3.msra.mxu1 %v465_v17  ;;  %1304 = vmatprep.subr.mxu0 %v446_v18 }
  0x52   :  { %1335 = vmatprep.subr.mxu1 %v480_v19  ;;  %1305 = vmatpush3.msra.mxu0 %v430_v22  ;;  %v2216_v19 = vsub.s32 %v326_v12, %v297_v60  ;;  %v496_v60 = vld [vmem:[%s2850_s3 + $0x240] sm:$0xff]  ;;  %v542_v12 = vld [vmem:[%s2850_s3 + $0x3b0] sm:$0xff] }
  0x53   :  { %1336 = vmatpush3.msra.mxu1 %v464_v20  ;;  %1306 = vmatprep.subr.mxu0 %v445_v24 }
  0x54   :  { %1337 = vmatprep.subr.mxu1 %v479_v21  ;;  %1307 = vmatpush3.msra.mxu0 %v429_v29 }
  0x55   :  { %1338 = vmatpush3.msra.mxu1 %v463_v23  ;;  %1308 = vmatprep.subr.mxu0 %v444_v31 }
  0x56   :  { %1339 = vmatprep.subr.mxu1 %v478_v25  ;;  %1309 = vmatpush3.msra.mxu0 %v428_v32 }
  0x57   :  { %1340 = vmatpush3.msra.mxu1 %v462_v30  ;;  %1310 = vmatprep.subr.mxu0 %v443_v34 }
  0x58   :  { %1341 = vmatprep.subr.mxu1 %v477_v27  ;;  %1311 = vmatpush3.msra.mxu0 %v427_v37  ;;  %v503_v27 = vld [vmem:[%s2850_s3 + $0x278] sm:$0xff] }
  0x59   :  { %1342 = vmatpush3.msra.mxu1 %v461_v33  ;;  %1312 = vmatprep.subr.mxu0 %v442_v39  ;;  %v518_v33 = vld [vmem:[%s2850_s3 + $0x2f0] sm:$0xff]  ;;  %v517_v39 = vld [vmem:[%s2850_s3 + $0x2e8] sm:$0xff] }
  0x5a   :  { %1343 = vmatprep.subr.mxu1 %v476_v35  ;;  %1313 = vmatpush3.msra.mxu0 %v426_v41  ;;  %v502_v35 = vld [vmem:[%s2850_s3 + $0x270] sm:$0xff] }
  0x5b   :  { %1344 = vmatpush3.msra.mxu1 %v460_v38  ;;  %1314 = vmatprep.subr.mxu0 %v441_v42  ;;  %v535_v38 = vld [vmem:[%s2850_s3 + $0x378] sm:$0xff]  ;;  %v534_v42 = vld [vmem:[%s2850_s3 + $0x370] sm:$0xff] }
  0x5c   :  { %1345 = vmatprep.subr.mxu1 %v475_v40  ;;  %1315 = vmatpush3.msra.mxu0 %v425_v44  ;;  %v550_v40 = vld [vmem:[%s2850_s3 + $0x3f0] sm:$0xff]  ;;  %v549_v44 = vld [vmem:[%s2850_s3 + $0x3e8] sm:$0xff] }
  0x5d   :  { %1346 = vmatpush3.msra.mxu1 %v459_v43  ;;  %1316 = vmatprep.subr.mxu0 %v440_v47  ;;  %v501_v43 = vld [vmem:[%s2850_s3 + $0x268] sm:$0xff] }
  0x5e   :  { %1347 = vmatprep.subr.mxu1 %v474_v28  ;;  %1317 = vmatpush3.msra.mxu0 %v424_v49  ;;  %v516_v28 = vld [vmem:[%s2850_s3 + $0x2e0] sm:$0xff]  ;;  %v533_v47 = vld [vmem:[%s2850_s3 + $0x368] sm:$0xff] }
  0x5f   :  { %1348 = vmatpush3.msra.mxu1 %v458_v45  ;;  %1356 = vmatprep.subr.mxu0 %v519_v52  ;;  %v500_v45 = vld [vmem:[%s2850_s3 + $0x260] sm:$0xff]  ;;  %v514_v52 = vld [vmem:[%s2850_s3 + $0x2d0] sm:$0xff] }
  0x60   :  { %1349 = vmatprep.subr.mxu1 %v473_v48  ;;  %v515_v48 = vld [vmem:[%s2850_s3 + $0x2d8] sm:$0xff]  ;;  %v548_v49 = vld [vmem:[%s2850_s3 + $0x3e0] sm:$0xff] }
  0x61   :  { %1350 = vmatpush3.msra.mxu1 %v457_v50  ;;  %v499_v50 = vld [vmem:[%s2850_s3 + $0x258] sm:$0xff] }
  0x62   :  { %1351 = vmatprep.subr.mxu1 %v472_v51  ;;  %v532_v51 = vld [vmem:[%s2850_s3 + $0x360] sm:$0xff] }
  0x63   :  { %1352 = vmatpush3.msra.mxu1 %v456_v46  ;;  %v547_v46 = vld [vmem:[%s2850_s3 + $0x3d8] sm:$0xff] }
  0x64   :  { %1391 = vmatprep.subr.mxu1 %v551_v53  ;;  %v498_v53 = vld [vmem:[%s2850_s3 + $0x250] sm:$0xff] }
  0xb2   :  { %v127_v56 = vpop.permute.xlu0 %126 }
  0xfe   :  { %v212_v57 = vpop.f32.mrf.mxu0 }
  0xff   :  { %v213_v58 = vadd.f32 %v212_v57, %v127_v56  ;;  %v530_v57 = vld [vmem:[%s2850_s3 + $0x350] sm:$0xff] }
 0x100   :  { %v214_v61 = vpop.f32.mrf.mxu0 }
 0x101   :  { %v288_v62 = vmax.f32 %v213_v58, 0.0  ;;  %v2193_v63 = vadd.f32 %v214_v61, %v127_v56  ;;  %v512_v58 = vld [vmem:[%s2850_s3 + $0x2c0] sm:$0xff]  ;;  %v529_v61 = vld [vmem:[%s2850_s3 + $0x348] sm:$0xff] }
 0x103   :  { %v292_v0 = vcombine.high %v288_v62, %v1754_v26  ;;  %v289_v7 = vmax.f32 %v2193_v63, 0.0  ;;  %v2203_v11 = vrot.slane %v288_v62, %v2196_v1  ;;  %v511_v62 = vld [vmem:[%s2850_s3 + $0x2b8] sm:$0xff]  ;;  %v492_v63 = vld [vmem:[%s2850_s3 + $0x220] sm:$0xff] }
 0x104   :  { %v283_v2 = vpop.f32.mrf.mxu1 }
 0x105   :  { %v306_v5 = vrot.slane %v292_v0, %v2196_v1  ;;  %v284_v6 = vadd.f32 %v283_v2, %v127_v56  ;;  %v365_v16 = vrot.slane %v289_v7, %v2196_v1  ;;  %v544_v0 = vld [vmem:[%s2850_s3 + $0x3c0] sm:$0xff]  ;;  %v495_v2 = vld [vmem:[%s2850_s3 + $0x238] sm:$0xff] }
 0x106   :  { %v285_v8 = vpop.f32.mrf.mxu1 }
 0x107   :  { %v290_v9 = vmax.f32 %v284_v6, 0.0  ;;  %v2200_v10 = vadd.f32 %v285_v8, %v127_v56  ;;  %v497_v56 = vld [vmem:[%s2850_s3 + $0x248] sm:$0xff]  ;;  %v494_v6 = vld [vmem:[%s2850_s3 + $0x230] sm:$0xff]  ;;  %v527_v8 = vld [vmem:[%s2850_s3 + $0x338] sm:$0xff] }
 0x109   :  { %v307_v13 = vcombine.high %v290_v9, %v1754_v26  ;;  %v2207_v14 = vrot.slane %v290_v9, %v2196_v1  ;;  %v291_v15 = vmax.f32 %v2200_v10, 0.0  ;;  %v509_v9 = vld [vmem:[%s2850_s3 + $0x2a8] sm:$0xff]  ;;  %v507_v10 = vld [vmem:[%s2850_s3 + $0x298] sm:$0xff] }
 0x10b   :  { %v321_v17 = vrot.slane %v307_v13, %v2196_v1  ;;  %v322_v18 = vcombine.low %v2203_v11, %v2207_v14  ;;  %v380_v20 = vrot.slane %v291_v15, %v2196_v1  ;;  %v493_v13 = vld [vmem:[%s2850_s3 + $0x228] sm:$0xff] }
 0x10d   :  { %v338_v21 = vcombine.low %v306_v5, %v321_v17  ;;  %v339_v22 = vcombine.high %v306_v5, %v321_v17  ;;  %v388_v23 = vcombine.low %v365_v16, %v380_v20  ;;  %v389_v24 = vcombine.high %v365_v16, %v380_v20  ;;  %v543_v5 = vld [vmem:[%s2850_s3 + $0x3b8] sm:$0xff]  ;;  %v526_v16 = vld [vmem:[%s2850_s3 + $0x330] sm:$0xff]  ;;  %v508_v20 = vld [vmem:[%s2850_s3 + $0x2a0] sm:$0xff] }
 0x10e   :  { %v330_v30 = vrot.slane %v322_v18, %v2216_v19  ;;  %v358_v17 = vcombine.high %v289_v7, %v1754_v26  ;;  %v373_v18 = vcombine.high %v291_v15, %v1754_v26  ;;  %v525_v7 = vld [vmem:[%s2850_s3 + $0x328] sm:$0xff]  ;;  %v540_v15 = vld [vmem:[%s2850_s3 + $0x3a0] sm:$0xff] }
 0x10f   :  { %v2222_v25 = vrot.slane %v338_v21, %v2216_v19  ;;  %v2225_v29 = vrot.slane %v339_v22, %v2216_v19  ;;  %v396_v31 = vrot.slane %v388_v23, %v2216_v19  ;;  %v403_v34 = vrot.slane %v389_v24, %v2216_v19  ;;  %v541_v21 = vld [vmem:[%s2850_s3 + $0x3a8] sm:$0xff]  ;;  %v491_v22 = vld [vmem:[%s2850_s3 + $0x218] sm:$0xff]  ;;  %v524_v23 = vld [vmem:[%s2850_s3 + $0x320] sm:$0xff] }
 0x110   :  { %v354_v37 = vcombine.high %v330_v30, %v1754_v26  ;;  %v2384_v24 = vrot.slane %v358_v17, %v2196_v1  ;;  %v560_v17 = vld [vmem:[%s2850_s3 + $0x440] sm:$0xff] }
 0x111   :  { %744 = vmatprep.mubr.f32.mxu0 %v396_v31  ;;  %v420_v32 = vcombine.high %v396_v31, %v1754_v26  ;;  %v421_v41 = vcombine.high %v403_v34, %v1754_v26  ;;  %v506_v31 = vld [vmem:[%s2850_s3 + $0x290] sm:$0xff] }
 0x112   :  { %745 = vmatmul.mubr.f32.vlgmr.msra.gmra.mxu0 %v330_v30  ;;  %v2387_v30 = vrot.slane %v373_v18, %v2196_v1  ;;  %v523_v1 = vld [vmem:[%s2850_s3 + $0x318] sm:$0xff]  ;;  %v593_v18 = vld [vmem:[%s2850_s3 + $0x548] sm:$0xff] }
 0x113   :  { %1357 = vmatpush3.msra.mxu0 %v503_v27  ;;  %814 = vmatprep.mubr.f32.mxu1 %v420_v32  ;;  %v539_v27 = vld [vmem:[%s2850_s3 + $0x398] sm:$0xff]  ;;  %v490_v32 = vld [vmem:[%s2850_s3 + $0x210] sm:$0xff] }
 0x114   :  { %1358 = vmatprep.subr.mxu0 %v518_v33  ;;  %884 = vmatprep.mubr.f32.mxu0 %v403_v34  ;;  %v323_v33 = vcombine.high %v2203_v11, %v2207_v14  ;;  %v505_v34 = vld [vmem:[%s2850_s3 + $0x288] sm:$0xff]  ;;  %v522_v11 = vld [vmem:[%s2850_s3 + $0x310] sm:$0xff]  ;;  %v504_v14 = vld [vmem:[%s2850_s3 + $0x280] sm:$0xff] }
 0x115   :  { %815 = vmatmul.mubr.f32.vlgmr.msra.gmra.mxu1 %v354_v37  ;;  %1359 = vmatpush3.msra.mxu0 %v502_v35  ;;  %v538_v35 = vld [vmem:[%s2850_s3 + $0x390] sm:$0xff]  ;;  %v489_v37 = vld [vmem:[%s2850_s3 + $0x208] sm:$0xff] }
 0x116   :  { %1392 = vmatpush3.msra.mxu1 %v535_v38  ;;  %1360 = vmatprep.subr.mxu0 %v517_v39  ;;  %v537_v38 = vld [vmem:[%s2850_s3 + $0x388] sm:$0xff]  ;;  %v404_v39 = vcombine.low %v2384_v24, %v2387_v30 }
 0x117   :  { %1393 = vmatprep.subr.mxu1 %v550_v40  ;;  %954 = vmatprep.mubr.f32.mxu1 %v421_v41  ;;  %v488_v40 = vld [vmem:[%s2850_s3 + $0x200] sm:$0xff]  ;;  %v521_v41 = vld [vmem:[%s2850_s3 + $0x308] sm:$0xff] }
 0x118   :  { %1361 = vmatpush3.msra.mxu0 %v501_v43  ;;  %1394 = vmatpush3.msra.mxu1 %v534_v42  ;;  %v337_v43 = vrot.slane %v323_v33, %v2216_v19  ;;  %v536_v42 = vld [vmem:[%s2850_s3 + $0x380] sm:$0xff] }
 0x119   :  { %1362 = vmatprep.subr.mxu0 %v516_v28  ;;  %1395 = vmatprep.subr.mxu1 %v549_v44  ;;  %v583_v28 = vld [vmem:[%s2850_s3 + $0x4f8] sm:$0xff]  ;;  %v520_v44 = vld [vmem:[%s2850_s3 + $0x300] sm:$0xff] }
 0x11a   :  { %1363 = vmatpush3.msra.mxu0 %v500_v45  ;;  %1396 = vmatpush3.msra.mxu1 %v533_v47  ;;  %v567_v45 = vld [vmem:[%s2850_s3 + $0x478] sm:$0xff]  ;;  %v412_v47 = vrot.slane %v404_v39, %v2216_v19  ;;  %v572_v33 = vld [vmem:[%s2850_s3 + $0x4a0] sm:$0xff] }
 0x11b   :  { %1364 = vmatprep.subr.mxu0 %v515_v48  ;;  %1397 = vmatprep.subr.mxu1 %v548_v49  ;;  %v582_v48 = vld [vmem:[%s2850_s3 + $0x4f0] sm:$0xff]  ;;  %v355_v49 = vcombine.high %v337_v43, %v1754_v26  ;;  %v588_v39 = vld [vmem:[%s2850_s3 + $0x520] sm:$0xff] }
 0x11c   :  { %1365 = vmatpush3.msra.mxu0 %v499_v50  ;;  %1398 = vmatpush3.msra.mxu1 %v532_v51  ;;  %v615_v50 = vld [vmem:[%s2850_s3 + $0x5f8] sm:$0xff]  ;;  %v566_v51 = vld [vmem:[%s2850_s3 + $0x470] sm:$0xff] }
 0x11d   :  { %1366 = vmatprep.subr.mxu0 %v514_v52  ;;  %1399 = vmatprep.subr.mxu1 %v547_v46  ;;  %v599_v52 = vld [vmem:[%s2850_s3 + $0x578] sm:$0xff]  ;;  %v422_v46 = vcombine.high %v412_v47, %v1754_v26 }
 0x11e   :  { %1367 = vmatpush3.msra.mxu0 %v498_v53  ;;  %1400 = vmatpush3.msra.mxu1 %v531_v36  ;;  %v581_v53 = vld [vmem:[%s2850_s3 + $0x4e8] sm:$0xff]  ;;  %v614_v36 = vld [vmem:[%s2850_s3 + $0x5f0] sm:$0xff] }
 0x11f   :  { %1368 = vmatprep.subr.mxu0 %v513_v54  ;;  %1401 = vmatprep.subr.mxu1 %v546_v55  ;;  %v565_v54 = vld [vmem:[%s2850_s3 + $0x468] sm:$0xff]  ;;  %v598_v55 = vld [vmem:[%s2850_s3 + $0x570] sm:$0xff] }
 0x120   :  { %1369 = vmatpush3.msra.mxu0 %v497_v56  ;;  %1402 = vmatpush3.msra.mxu1 %v530_v57  ;;  %v580_v56 = vld [vmem:[%s2850_s3 + $0x4e0] sm:$0xff]  ;;  %v613_v57 = vld [vmem:[%s2850_s3 + $0x5e8] sm:$0xff] }
 0x121   :  { %1370 = vmatprep.subr.mxu0 %v512_v58  ;;  %1403 = vmatprep.subr.mxu1 %v545_v59  ;;  %v564_v58 = vld [vmem:[%s2850_s3 + $0x460] sm:$0xff]  ;;  %v597_v59 = vld [vmem:[%s2850_s3 + $0x568] sm:$0xff] }
 0x122   :  { %1371 = vmatpush3.msra.mxu0 %v496_v60  ;;  %1404 = vmatpush3.msra.mxu1 %v529_v61  ;;  %v579_v60 = vld [vmem:[%s2850_s3 + $0x4d8] sm:$0xff]  ;;  %v612_v61 = vld [vmem:[%s2850_s3 + $0x5e0] sm:$0xff] }
 0x123   :  { %1372 = vmatprep.subr.mxu0 %v511_v62  ;;  %1405 = vmatprep.subr.mxu1 %v544_v0  ;;  %v563_v62 = vld [vmem:[%s2850_s3 + $0x458] sm:$0xff]  ;;  %v596_v0 = vld [vmem:[%s2850_s3 + $0x560] sm:$0xff] }
 0x124   :  { %1373 = vmatpush3.msra.mxu0 %v495_v2  ;;  %1406 = vmatpush3.msra.mxu1 %v528_v3  ;;  %v578_v2 = vld [vmem:[%s2850_s3 + $0x4d0] sm:$0xff]  ;;  %v611_v3 = vld [vmem:[%s2850_s3 + $0x5d8] sm:$0xff] }
 0x125   :  { %1374 = vmatprep.subr.mxu0 %v510_v4  ;;  %1407 = vmatprep.subr.mxu1 %v543_v5  ;;  %v562_v4 = vld [vmem:[%s2850_s3 + $0x450] sm:$0xff]  ;;  %v595_v5 = vld [vmem:[%s2850_s3 + $0x558] sm:$0xff] }
 0x126   :  { %1375 = vmatpush3.msra.mxu0 %v494_v6  ;;  %1408 = vmatpush3.msra.mxu1 %v527_v8  ;;  %v577_v6 = vld [vmem:[%s2850_s3 + $0x4c8] sm:$0xff]  ;;  %v610_v8 = vld [vmem:[%s2850_s3 + $0x5d0] sm:$0xff] }
 0x127   :  { %1376 = vmatprep.subr.mxu0 %v509_v9  ;;  %1409 = vmatprep.subr.mxu1 %v542_v12  ;;  %v561_v9 = vld [vmem:[%s2850_s3 + $0x448] sm:$0xff]  ;;  %v594_v12 = vld [vmem:[%s2850_s3 + $0x550] sm:$0xff] }
 0x128   :  { %1377 = vmatpush3.msra.mxu0 %v493_v13  ;;  %1410 = vmatpush3.msra.mxu1 %v526_v16  ;;  %v576_v13 = vld [vmem:[%s2850_s3 + $0x4c0] sm:$0xff]  ;;  %v609_v16 = vld [vmem:[%s2850_s3 + $0x5c8] sm:$0xff] }
 0x129   :  { %1378 = vmatprep.subr.mxu0 %v508_v20  ;;  %1411 = vmatprep.subr.mxu1 %v541_v21  ;;  %v575_v20 = vld [vmem:[%s2850_s3 + $0x4b8] sm:$0xff]  ;;  %v608_v21 = vld [vmem:[%s2850_s3 + $0x5c0] sm:$0xff] }
 0x12a   :  { %1379 = vmatpush3.msra.mxu0 %v492_v63  ;;  %1412 = vmatpush3.msra.mxu1 %v525_v7  ;;  %v559_v63 = vld [vmem:[%s2850_s3 + $0x438] sm:$0xff]  ;;  %v592_v7 = vld [vmem:[%s2850_s3 + $0x540] sm:$0xff] }
 0x12b   :  { %1380 = vmatprep.subr.mxu0 %v507_v10  ;;  %1413 = vmatprep.subr.mxu1 %v540_v15  ;;  %v574_v10 = vld [vmem:[%s2850_s3 + $0x4b0] sm:$0xff]  ;;  %v607_v15 = vld [vmem:[%s2850_s3 + $0x5b8] sm:$0xff] }
 0x12c   :  { %1381 = vmatpush3.msra.mxu0 %v491_v22  ;;  %1414 = vmatpush3.msra.mxu1 %v524_v23  ;;  %v558_v22 = vld [vmem:[%s2850_s3 + $0x430] sm:$0xff]  ;;  %v591_v23 = vld [vmem:[%s2850_s3 + $0x538] sm:$0xff] }
 0x12d   :  { %1382 = vmatprep.subr.mxu0 %v506_v31  ;;  %1415 = vmatprep.subr.mxu1 %v539_v27  ;;  %v573_v31 = vld [vmem:[%s2850_s3 + $0x4a8] sm:$0xff]  ;;  %v606_v27 = vld [vmem:[%s2850_s3 + $0x5b0] sm:$0xff] }
 0x12e   :  { %1383 = vmatpush3.msra.mxu0 %v490_v32  ;;  %1416 = vmatpush3.msra.mxu1 %v523_v1  ;;  %v557_v32 = vld [vmem:[%s2850_s3 + $0x428] sm:$0xff]  ;;  %v590_v1 = vld [vmem:[%s2850_s3 + $0x530] sm:$0xff] }
 0x12f   :  { %1384 = vmatprep.subr.mxu0 %v505_v34  ;;  %1417 = vmatprep.subr.mxu1 %v538_v35  ;;  %v605_v34 = vld [vmem:[%s2850_s3 + $0x5a8] sm:$0xff]  ;;  %v556_v35 = vld [vmem:[%s2850_s3 + $0x420] sm:$0xff] }
 0x130   :  { %1385 = vmatpush3.msra.mxu0 %v489_v37  ;;  %1418 = vmatpush3.msra.mxu1 %v522_v11  ;;  %v589_v37 = vld [vmem:[%s2850_s3 + $0x528] sm:$0xff]  ;;  %v571_v11 = vld [vmem:[%s2850_s3 + $0x498] sm:$0xff] }
 0x131   :  { %1386 = vmatprep.subr.mxu0 %v504_v14  ;;  %1419 = vmatprep.subr.mxu1 %v537_v38  ;;  %v604_v14 = vld [vmem:[%s2850_s3 + $0x5a0] sm:$0xff]  ;;  %v555_v38 = vld [vmem:[%s2850_s3 + $0x418] sm:$0xff] }
 0x132   :  { %1387 = vmatpush3.msra.mxu0 %v488_v40  ;;  %1420 = vmatpush3.msra.mxu1 %v521_v41  ;;  %v570_v40 = vld [vmem:[%s2850_s3 + $0x490] sm:$0xff]  ;;  %v603_v41 = vld [vmem:[%s2850_s3 + $0x598] sm:$0xff] }
 0x133   :  { %885 = vmatmul.mubr.f32.vlgmr.msra.gmra.mxu0 %v337_v43  ;;  %1421 = vmatprep.subr.mxu1 %v536_v42  ;;  %v554_v43 = vld [vmem:[%s2850_s3 + $0x410] sm:$0xff]  ;;  %v587_v42 = vld [vmem:[%s2850_s3 + $0x518] sm:$0xff] }
 0x134   :  { %1426 = vmatprep.subr.mxu0 %v583_v28  ;;  %1422 = vmatpush3.msra.mxu1 %v520_v44  ;;  %v569_v28 = vld [vmem:[%s2850_s3 + $0x488] sm:$0xff]  ;;  %v602_v44 = vld [vmem:[%s2850_s3 + $0x590] sm:$0xff] }
 0x135   :  { %1427 = vmatpush3.msra.mxu0 %v567_v45  ;;  %1024 = vmatprep.mubr.f32.mxu0 %v412_v47  ;;  %v553_v45 = vld [vmem:[%s2850_s3 + $0x408] sm:$0xff]  ;;  %v586_v47 = vld [vmem:[%s2850_s3 + $0x510] sm:$0xff] }
 0x136   :  { %955 = vmatmul.mubr.f32.vlgmr.msra.gmra.mxu1 %v355_v49  ;;  %1428 = vmatprep.subr.mxu0 %v582_v48  ;;  %v568_v48 = vld [vmem:[%s2850_s3 + $0x480] sm:$0xff]  ;;  %v601_v49 = vld [vmem:[%s2850_s3 + $0x588] sm:$0xff] }
 0x137   :  { %1461 = vmatprep.subr.mxu1 %v615_v50  ;;  %1429 = vmatpush3.msra.mxu0 %v566_v51  ;;  %v405_v50 = vcombine.high %v2384_v24, %v2387_v30  ;;  %v552_v51 = vld [vmem:[%s2850_s3 + $0x400] sm:$0xff]  ;;  %v647_v24 = vld [vmem:[%s2850_s3 + $0x6f8] sm:$0xff] }
 0x138   :  { %1462 = vmatpush3.msra.mxu1 %v599_v52  ;;  %1094 = vmatprep.mubr.f32.mxu1 %v422_v46  ;;  %v585_v52 = vld [vmem:[%s2850_s3 + $0x508] sm:$0xff]  ;;  %v600_v46 = vld [vmem:[%s2850_s3 + $0x580] sm:$0xff] }
 0x139   :  { %1430 = vmatprep.subr.mxu0 %v581_v53  ;;  %1463 = vmatprep.subr.mxu1 %v614_v36  ;;  %v584_v30 = vld [vmem:[%s2850_s3 + $0x500] sm:$0xff]  ;;  %v631_v53 = vld [vmem:[%s2850_s3 + $0x678] sm:$0xff]  ;;  %v419_v36 = vrot.slane %v405_v50, %v2216_v19  ;;  %v630_v19 = vld [vmem:[%s2850_s3 + $0x670] sm:$0xff] }
 0x13a   :  { %1431 = vmatpush3.msra.mxu0 %v565_v54  ;;  %1464 = vmatpush3.msra.mxu1 %v598_v55  ;;  %v646_v54 = vld [vmem:[%s2850_s3 + $0x6f0] sm:$0xff]  ;;  %v356_v55 = vcombine.high %v2222_v25, %v1754_v26  ;;  %v633_v50 = vld [vmem:[%s2850_s3 + $0x688] sm:$0xff] }
 0x13b   :  { %1432 = vmatprep.subr.mxu0 %v580_v56  ;;  %1465 = vmatprep.subr.mxu1 %v613_v57  ;;  %v679_v56 = vld [vmem:[%s2850_s3 + $0x7f8] sm:$0xff] }
 0x13c   :  { %1433 = vmatpush3.msra.mxu0 %v564_v58  ;;  %1466 = vmatpush3.msra.mxu1 %v597_v59  ;;  %v663_v57 = vld [vmem:[%s2850_s3 + $0x778] sm:$0xff]  ;;  %v423_v58 = vcombine.high %v419_v36, %v1754_v26  ;;  %v678_v59 = vld [vmem:[%s2850_s3 + $0x7f0] sm:$0xff] }
 0x13d   :  { %1434 = vmatprep.subr.mxu0 %v579_v60  ;;  %1467 = vmatprep.subr.mxu1 %v612_v61  ;;  %v629_v60 = vld [vmem:[%s2850_s3 + $0x668] sm:$0xff]  ;;  %v662_v61 = vld [vmem:[%s2850_s3 + $0x770] sm:$0xff] }
 0x13e   :  { %1435 = vmatpush3.msra.mxu0 %v563_v62  ;;  %1468 = vmatpush3.msra.mxu1 %v596_v0  ;;  %v644_v62 = vld [vmem:[%s2850_s3 + $0x6e0] sm:$0xff]  ;;  %v677_v0 = vld [vmem:[%s2850_s3 + $0x7e8] sm:$0xff] }
 0x13f   :  { %1436 = vmatprep.subr.mxu0 %v578_v2  ;;  %1469 = vmatprep.subr.mxu1 %v611_v3  ;;  %v628_v2 = vld [vmem:[%s2850_s3 + $0x660] sm:$0xff]  ;;  %v661_v3 = vld [vmem:[%s2850_s3 + $0x768] sm:$0xff] }
 0x140   :  { %1437 = vmatpush3.msra.mxu0 %v562_v4  ;;  %1470 = vmatpush3.msra.mxu1 %v595_v5  ;;  %v643_v4 = vld [vmem:[%s2850_s3 + $0x6d8] sm:$0xff]  ;;  %v676_v5 = vld [vmem:[%s2850_s3 + $0x7e0] sm:$0xff] }
 0x141   :  { %1438 = vmatprep.subr.mxu0 %v577_v6  ;;  %1471 = vmatprep.subr.mxu1 %v610_v8  ;;  %v627_v6 = vld [vmem:[%s2850_s3 + $0x658] sm:$0xff]  ;;  %v660_v8 = vld [vmem:[%s2850_s3 + $0x760] sm:$0xff] }
 0x142   :  { %1439 = vmatpush3.msra.mxu0 %v561_v9  ;;  %1472 = vmatpush3.msra.mxu1 %v594_v12  ;;  %v642_v9 = vld [vmem:[%s2850_s3 + $0x6d0] sm:$0xff]  ;;  %v675_v12 = vld [vmem:[%s2850_s3 + $0x7d8] sm:$0xff] }
 0x143   :  { %1440 = vmatprep.subr.mxu0 %v576_v13  ;;  %1473 = vmatprep.subr.mxu1 %v609_v16  ;;  %v626_v13 = vld [vmem:[%s2850_s3 + $0x650] sm:$0xff]  ;;  %v659_v16 = vld [vmem:[%s2850_s3 + $0x758] sm:$0xff] }
 0x144   :  { %1441 = vmatpush3.msra.mxu0 %v560_v17  ;;  %1474 = vmatpush3.msra.mxu1 %v593_v18  ;;  %v641_v17 = vld [vmem:[%s2850_s3 + $0x6c8] sm:$0xff]  ;;  %v674_v18 = vld [vmem:[%s2850_s3 + $0x7d0] sm:$0xff] }
 0x145   :  { %1442 = vmatprep.subr.mxu0 %v575_v20  ;;  %1475 = vmatprep.subr.mxu1 %v608_v21  ;;  %v625_v20 = vld [vmem:[%s2850_s3 + $0x648] sm:$0xff]  ;;  %v658_v21 = vld [vmem:[%s2850_s3 + $0x750] sm:$0xff] }
 0x146   :  { %1443 = vmatpush3.msra.mxu0 %v559_v63  ;;  %1476 = vmatpush3.msra.mxu1 %v592_v7  ;;  %v640_v63 = vld [vmem:[%s2850_s3 + $0x6c0] sm:$0xff]  ;;  %v673_v7 = vld [vmem:[%s2850_s3 + $0x7c8] sm:$0xff] }
 0x147   :  { %1444 = vmatprep.subr.mxu0 %v574_v10  ;;  %1477 = vmatprep.subr.mxu1 %v607_v15  ;;  %v624_v10 = vld [vmem:[%s2850_s3 + $0x640] sm:$0xff]  ;;  %v657_v15 = vld [vmem:[%s2850_s3 + $0x748] sm:$0xff] }
 0x148   :  { %1445 = vmatpush3.msra.mxu0 %v558_v22  ;;  %1478 = vmatpush3.msra.mxu1 %v591_v23  ;;  %v639_v22 = vld [vmem:[%s2850_s3 + $0x6b8] sm:$0xff]  ;;  %v672_v23 = vld [vmem:[%s2850_s3 + $0x7c0] sm:$0xff] }
 0x149   :  { %1446 = vmatprep.subr.mxu0 %v573_v31  ;;  %1479 = vmatprep.subr.mxu1 %v606_v27  ;;  %v623_v31 = vld [vmem:[%s2850_s3 + $0x638] sm:$0xff]  ;;  %v656_v27 = vld [vmem:[%s2850_s3 + $0x740] sm:$0xff] }
 0x14a   :  { %1447 = vmatpush3.msra.mxu0 %v557_v32  ;;  %1480 = vmatpush3.msra.mxu1 %v590_v1  ;;  %v638_v32 = vld [vmem:[%s2850_s3 + $0x6b0] sm:$0xff]  ;;  %v671_v1 = vld [vmem:[%s2850_s3 + $0x7b8] sm:$0xff] }
 0x14b   :  { %1448 = vmatprep.subr.mxu0 %v572_v33  ;;  %1481 = vmatprep.subr.mxu1 %v605_v34  ;;  %v622_v33 = vld [vmem:[%s2850_s3 + $0x630] sm:$0xff]  ;;  %v655_v34 = vld [vmem:[%s2850_s3 + $0x738] sm:$0xff] }
 0x14c   :  { %1449 = vmatpush3.msra.mxu0 %v556_v35  ;;  %1482 = vmatpush3.msra.mxu1 %v589_v37  ;;  %v637_v35 = vld [vmem:[%s2850_s3 + $0x6a8] sm:$0xff]  ;;  %v670_v37 = vld [vmem:[%s2850_s3 + $0x7b0] sm:$0xff] }
 0x14d   :  { %1450 = vmatprep.subr.mxu0 %v571_v11  ;;  %1483 = vmatprep.subr.mxu1 %v604_v14  ;;  %v621_v11 = vld [vmem:[%s2850_s3 + $0x628] sm:$0xff]  ;;  %v654_v14 = vld [vmem:[%s2850_s3 + $0x730] sm:$0xff] }
 0x14e   :  { %1451 = vmatpush3.msra.mxu0 %v555_v38  ;;  %1484 = vmatpush3.msra.mxu1 %v588_v39  ;;  %v636_v38 = vld [vmem:[%s2850_s3 + $0x6a0] sm:$0xff]  ;;  %v669_v39 = vld [vmem:[%s2850_s3 + $0x7a8] sm:$0xff] }
 0x14f   :  { %1452 = vmatprep.subr.mxu0 %v570_v40  ;;  %1485 = vmatprep.subr.mxu1 %v603_v41  ;;  %v620_v40 = vld [vmem:[%s2850_s3 + $0x620] sm:$0xff]  ;;  %v653_v41 = vld [vmem:[%s2850_s3 + $0x728] sm:$0xff] }
 0x150   :  { %1453 = vmatpush3.msra.mxu0 %v554_v43  ;;  %1486 = vmatpush3.msra.mxu1 %v587_v42  ;;  %v635_v43 = vld [vmem:[%s2850_s3 + $0x698] sm:$0xff]  ;;  %v668_v42 = vld [vmem:[%s2850_s3 + $0x7a0] sm:$0xff] }
 0x151   :  { %1454 = vmatprep.subr.mxu0 %v569_v28  ;;  %1487 = vmatprep.subr.mxu1 %v602_v44  ;;  %v619_v28 = vld [vmem:[%s2850_s3 + $0x618] sm:$0xff]  ;;  %v652_v44 = vld [vmem:[%s2850_s3 + $0x720] sm:$0xff] }
 0x152   :  { %1455 = vmatpush3.msra.mxu0 %v553_v45  ;;  %1488 = vmatpush3.msra.mxu1 %v586_v47  ;;  %v634_v45 = vld [vmem:[%s2850_s3 + $0x690] sm:$0xff]  ;;  %v667_v47 = vld [vmem:[%s2850_s3 + $0x798] sm:$0xff] }
 0x153   :  { %1456 = vmatprep.subr.mxu0 %v568_v48  ;;  %1489 = vmatprep.subr.mxu1 %v601_v49  ;;  %v618_v48 = vld [vmem:[%s2850_s3 + $0x610] sm:$0xff]  ;;  %v651_v49 = vld [vmem:[%s2850_s3 + $0x718] sm:$0xff] }
 0x154   :  { %1457 = vmatpush3.msra.mxu0 %v552_v51  ;;  %1490 = vmatpush3.msra.mxu1 %v585_v52  ;;  %v666_v51 = vld [vmem:[%s2850_s3 + $0x790] sm:$0xff]  ;;  %v617_v52 = vld [vmem:[%s2850_s3 + $0x608] sm:$0xff] }
 0x155   :  { %1025 = vmatmul.mubr.f32.vlgmr.msra.gmra.mxu0 %v2222_v25  ;;  %1491 = vmatprep.subr.mxu1 %v600_v46  ;;  %v645_v25 = vld [vmem:[%s2850_s3 + $0x6e8] sm:$0xff]  ;;  %v650_v46 = vld [vmem:[%s2850_s3 + $0x710] sm:$0xff] }
 0x156   :  { %1496 = vmatprep.subr.mxu0 %v647_v24  ;;  %1492 = vmatpush3.msra.mxu1 %v584_v30  ;;  %v632_v24 = vld [vmem:[%s2850_s3 + $0x680] sm:$0xff]  ;;  %v665_v30 = vld [vmem:[%s2850_s3 + $0x788] sm:$0xff] }
 0x157   :  { %1497 = vmatpush3.msra.mxu0 %v631_v53  ;;  %1164 = vmatprep.mubr.f32.mxu0 %v419_v36  ;;  %v616_v53 = vld [vmem:[%s2850_s3 + $0x600] sm:$0xff]  ;;  %v649_v36 = vld [vmem:[%s2850_s3 + $0x708] sm:$0xff] }
 0x158   :  { %1095 = vmatmul.mubr.f32.vlgmr.msra.gmra.mxu1 %v356_v55  ;;  %1498 = vmatprep.subr.mxu0 %v646_v54  ;;  %v664_v54 = vld [vmem:[%s2850_s3 + $0x780] sm:$0xff] }
 0x159   :  { %1531 = vmatprep.subr.mxu1 %v679_v56  ;;  %1499 = vmatpush3.msra.mxu0 %v630_v19  ;;  %v648_v55 = vld [vmem:[%s2850_s3 + $0x700] sm:$0xff]  ;;  %v357_v56 = vcombine.high %v2225_v29, %v1754_v26 }
 0x15a   :  { %1532 = vmatpush3.msra.mxu1 %v663_v57  ;;  %1234 = vmatprep.mubr.f32.mxu1 %v423_v58 }
 0x15b   :  { %1500 = vmatprep.subr.mxu0 %v645_v25  ;;  %1533 = vmatprep.subr.mxu1 %v678_v59 }
 0x15c   :  { %1501 = vmatpush3.msra.mxu0 %v629_v60  ;;  %1534 = vmatpush3.msra.mxu1 %v662_v61 }
 0x15d   :  { %1502 = vmatprep.subr.mxu0 %v644_v62  ;;  %1535 = vmatprep.subr.mxu1 %v677_v0 }
 0x15e   :  { %1503 = vmatpush3.msra.mxu0 %v628_v2  ;;  %1536 = vmatpush3.msra.mxu1 %v661_v3 }
 0x15f   :  { %1504 = vmatprep.subr.mxu0 %v643_v4  ;;  %1537 = vmatprep.subr.mxu1 %v676_v5 }
 0x160   :  { %1505 = vmatpush3.msra.mxu0 %v627_v6  ;;  %1538 = vmatpush3.msra.mxu1 %v660_v8 }
 0x161   :  { %1506 = vmatprep.subr.mxu0 %v642_v9  ;;  %1539 = vmatprep.subr.mxu1 %v675_v12 }
 0x162   :  { %1507 = vmatpush3.msra.mxu0 %v626_v13  ;;  %1540 = vmatpush3.msra.mxu1 %v659_v16 }
 0x163   :  { %1508 = vmatprep.subr.mxu0 %v641_v17  ;;  %1541 = vmatprep.subr.mxu1 %v674_v18 }
 0x164   :  { %1509 = vmatpush3.msra.mxu0 %v625_v20  ;;  %1542 = vmatpush3.msra.mxu1 %v658_v21 }
 0x165   :  { %1510 = vmatprep.subr.mxu0 %v640_v63  ;;  %1543 = vmatprep.subr.mxu1 %v673_v7 }
 0x166   :  { %1511 = vmatpush3.msra.mxu0 %v624_v10  ;;  %1544 = vmatpush3.msra.mxu1 %v657_v15 }
 0x167   :  { %1512 = vmatprep.subr.mxu0 %v639_v22  ;;  %1545 = vmatprep.subr.mxu1 %v672_v23 }
 0x168   :  { %1513 = vmatpush3.msra.mxu0 %v623_v31  ;;  %1546 = vmatpush3.msra.mxu1 %v656_v27 }
 0x169   :  { %1514 = vmatprep.subr.mxu0 %v638_v32  ;;  %1547 = vmatprep.subr.mxu1 %v671_v1 }
 0x16a   :  { %1515 = vmatpush3.msra.mxu0 %v622_v33  ;;  %1548 = vmatpush3.msra.mxu1 %v655_v34 }
 0x16b   :  { %1516 = vmatprep.subr.mxu0 %v637_v35  ;;  %1549 = vmatprep.subr.mxu1 %v670_v37  ;;  %v1285_v37 = vld [vmem:[%s2851_s4] ss:$0 sm:$0xff] }
 0x16c   :  { %1517 = vmatpush3.msra.mxu0 %v621_v11  ;;  %1550 = vmatpush3.msra.mxu1 %v654_v14 }
 0x16d   :  { %1518 = vmatprep.subr.mxu0 %v636_v38  ;;  %1551 = vmatprep.subr.mxu1 %v669_v39 }
 0x16e   :  { %1519 = vmatpush3.msra.mxu0 %v620_v40  ;;  %1552 = vmatpush3.msra.mxu1 %v653_v41 }
 0x16f   :  { %1520 = vmatprep.subr.mxu0 %v635_v43  ;;  %1553 = vmatprep.subr.mxu1 %v668_v42 }
 0x170   :  { %1521 = vmatpush3.msra.mxu0 %v619_v28  ;;  %1554 = vmatpush3.msra.mxu1 %v652_v44 }
 0x171   :  { %1522 = vmatprep.subr.mxu0 %v634_v45  ;;  %1555 = vmatprep.subr.mxu1 %v667_v47 }
 0x172   :  { %1523 = vmatpush3.msra.mxu0 %v618_v48  ;;  %1556 = vmatpush3.msra.mxu1 %v651_v49 }
 0x173   :  { %1524 = vmatprep.subr.mxu0 %v633_v50  ;;  %1557 = vmatprep.subr.mxu1 %v666_v51 }
 0x174   :  { %1525 = vmatpush3.msra.mxu0 %v617_v52  ;;  %1558 = vmatpush3.msra.mxu1 %v650_v46 }
 0x175   :  { %1526 = vmatprep.subr.mxu0 %v632_v24  ;;  %1559 = vmatprep.subr.mxu1 %v665_v30 }
 0x176   :  { %1527 = vmatpush3.msra.mxu0 %v616_v53  ;;  %1560 = vmatpush3.msra.mxu1 %v649_v36 }
 0x177   :  { %1165 = vmatmul.mubr.f32.vlgmr.msra.gmra.mxu0 %v2225_v29  ;;  %1561 = vmatprep.subr.mxu1 %v664_v54 }
 0x178   :  { %1562 = vmatpush3.msra.mxu1 %v648_v55 }
 0x179   :  { %1235 = vmatmul.mubr.f32.vlgmr.msra.gmra.mxu1 %v357_v56 }
 0x1d2   :  { %v1318_v19 = vpop.f32.mrf.mxu0 }
 0x1d4   :  { %v1319_v57 = vpop.f32.mrf.mxu0 }
 0x1d5   :  { %v1353_v58 = vpop.f32.mrf.mxu1  ;;  %v1320_v2 = vadd.f32 %v1319_v57, %v1318_v19 }
 0x1d7   :  { %v1354_v59 = vpop.f32.mrf.mxu1  ;;  %v1241_v26 = vsel %vm1240_vm6, %v1320_v2, 0.0 }
 0x1d8   :  { %v1355_v62 = vadd.f32 %v1354_v59, %v1353_v58 }
 0x1da   :  { %v1242_v5 = vsel %vm1240_vm6, %v1355_v62, 0.0 }
 0x1db   :  { %v1243_v12 = vadd.f32 %v1242_v5, %v1241_v26 }
 0x1f3   :  { %v1388_v25 = vpop.f32.mrf.mxu0 }
 0x1f5   :  { %v1389_v60 = vpop.f32.mrf.mxu0 }
 0x1f6   :  { %v1423_v61 = vpop.f32.mrf.mxu1  ;;  %v1390_v3 = vadd.f32 %v1389_v60, %v1388_v25 }
 0x1f8   :  { %v1424_v4 = vpop.f32.mrf.mxu1  ;;  %v1244_v29 = vsel %vm1240_vm6, %v1390_v3, 0.0 }
 0x1f9   :  { %v1425_v9 = vadd.f32 %v1424_v4, %v1423_v61  ;;  %v1245_v16 = vadd.f32 %v1244_v29, %v1243_v12 }
 0x1fb   :  { %v1246_v18 = vsel %vm1240_vm6, %v1425_v9, 0.0 }
 0x1fc   :  { %v1247_v63 = vadd.f32 %v1246_v18, %v1245_v16 }
 0x215   :  { %v1458_v0 = vpop.f32.mrf.mxu0 }
 0x217   :  { %v1459_v6 = vpop.f32.mrf.mxu0 }
 0x218   :  { %v1493_v8 = vpop.f32.mrf.mxu1  ;;  %v1460_v13 = vadd.f32 %v1459_v6, %v1458_v0 }
 0x21a   :  { %v1494_v17 = vpop.f32.mrf.mxu1  ;;  %v1248_v20 = vsel %vm1240_vm6, %v1460_v13, 0.0 }
 0x21b   :  { %v1495_v21 = vadd.f32 %v1494_v17, %v1493_v8  ;;  %v1249_v7 = vadd.f32 %v1248_v20, %v1247_v63 }
 0x21d   :  { %v1250_v15 = vsel %vm1240_vm6, %v1495_v21, 0.0 }
 0x21e   :  { %v1251_v27 = vadd.f32 %v1250_v15, %v1249_v7 }
 0x237   :  { %v1528_v10 = vpop.f32.mrf.mxu0 }
 0x239   :  { %v1529_v22 = vpop.f32.mrf.mxu0  ;;  %v1563_v23 = vpop.f32.mrf.mxu1 }
 0x23a   :  { %v1530_v31 = vadd.f32 %v1529_v22, %v1528_v10 }
 0x23b   :  { %v1564_v32 = vpop.f32.mrf.mxu1 }
 0x23c   :  { %v1252_v1 = vsel %vm1240_vm6, %v1530_v31, 0.0  ;;  %v1565_v33 = vadd.f32 %v1564_v32, %v1563_v23 }
 0x23d   :  { %v1253_v34 = vadd.f32 %v1252_v1, %v1251_v27 }
 0x23e   :  { %v1254_v35 = vsel %vm1240_vm6, %v1565_v33, 0.0 }
 0x23f   :  { %v1255_v11 = vadd.f32 %v1254_v35, %v1253_v34 }
 0x241   :  { %v1263_v14 = vadd.f32 %v1285_v37, %v1255_v11 }
 0x243   :  { %1264 = vst [vmem:[#allocation2] sm:$0x3] %v1263_v14 }
 0x244   :  { %1743 = shalt.err (!%p1740_p4)
}
 0x245   :  { %1274 = dma.vmem_to_hbm [thread:$0]  %s1272_s19, 32, %s2852_s5, [#allocation3]  }
 0x246   :  { %1752 = dma.done.wait [#allocation3], 32  }
 0x247   :  { %1753 = vsyncadd [#allocation3], 4294967264 }
 0x248   :  { %1278 = vsyncpa [#allocation3], 1 }

</bundles_post_ra>
